<compile_context>
chip_gen: v7x
topology: tpu7x:2x2x1
jax: 0.10.0
libtpu: 0.0.40
codegen_flags: <defaults>
</compile_context>

<pallas_src>
import functools
from math import pi

import jax
import jax.numpy as jnp
from jax.experimental import pallas as pl
from jax.experimental.pallas import tpu as pltpu


# ----------------------------------------------------------------------------
# Kernels
# ----------------------------------------------------------------------------
def _dense_matmul_kernel(w_ref, x_ref, out_ref):
    # w_ref:   (out_f, in_f)  weight, resident across the grid (constant index)
    # x_ref:   (in_f,  tT)    one (batch, time-tile) slab of the input
    # out_ref: (out_f, tT)    matching output slab (float32)
    out_ref[...] = jnp.dot(
        w_ref[...], x_ref[...], preferred_element_type=jnp.float32
    )


def _neuron_const_kernel(wt_ref, scale_ref, mult_ref, *, scaling):
    # wt_ref: (in_f, out_f) = W^T (float32).  Column-sum of W^T == row-sum of W.
    c = (1.0 + jnp.sum(wt_ref[...], axis=0, keepdims=True)) / scaling  # (1, out)
    c = jnp.maximum(c, 0.0)                                            # clamp_(0)
    scale_ref[...] = -1.0 / (1.0 + c)
    mult_ref[...] = (c - 1.0) / (c + 1.0)


# ----------------------------------------------------------------------------
# Wrapper
# ----------------------------------------------------------------------------
def _choose_time_tile(T, in_f, out_f, itemsize):
    """Pick a lane-dense (multiple-of-128) time tile when T allows it."""
    if T % 128 == 0:
        for cand in (1024, 512, 256, 128):
            # Keep double-buffered x + out blocks well under the scoped-VMEM
            # default (32 MiB on v6e/v7x; v7x physical VMEM is only 64 MiB).
            if T % cand == 0 and 2 * cand * (in_f * itemsize + out_f * 4) <= 16 * 1024 * 1024:
                return cand
        return 128
    return T  # small / irregular T: single full-T tile


def dense_forward(x, weight, *, kvco=5e8, kpd=1.0 / pi, timestep=1e-9,
                  threshold=-0.5, alpha=0.5, compute_dtype=jnp.float32):
    """Pallas implementation of Dense.forward up to (but excluding) AnalogNeuron.

    Args:
      x:      (B, in_features, T) float32 — same axis convention as PyTorch.
      weight: (out_features, in_features) float32 — nn.Linear weight (no bias).
      compute_dtype: dtype fed to the MXU (set jnp.bfloat16 for ~2x on v6e/v7x
        if precision allows); accumulation is always float32.

    Returns:
      outs (B, out_features, T) float32, threshold, scale (1, out), mult (1, out), alpha
    """
    B, in_f, T = x.shape
    out_f = weight.shape[0]
    scaling = kvco * kpd * timestep / 2.0

    itemsize = jnp.dtype(compute_dtype).itemsize
    tT = _choose_time_tile(T, in_f, out_f, itemsize)
    nT = T // tT

    x_c = x.astype(compute_dtype)
    w_c = weight.astype(compute_dtype)

    cost = pl.CostEstimate(
        flops=2 * B * T * in_f * out_f,
        transcendentals=0,
        bytes_accessed=x_c.size * itemsize + w_c.size * itemsize + B * out_f * T * 4,
    )

    # Hot path: gridded over (batch, time-tiles); weight stays VMEM-resident.
    # TODO(synk): if in_features ever gets large, add a K grid axis (last,
    # "arbitrary") with a VMEM f32 accumulator to bound per-step VMEM.
    outs = pl.pallas_call(
        _dense_matmul_kernel,
        out_shape=jax.ShapeDtypeStruct((B, out_f, T), jnp.float32),
        grid_spec=pltpu.PrefetchScalarGridSpec(
            num_scalar_prefetch=0,
            grid=(B, nT),
            in_specs=[
                pl.BlockSpec((out_f, in_f), lambda b, t: (0, 0)),        # resident W
                pl.BlockSpec((None, in_f, tT), lambda b, t: (b, 0, t)),  # x slab
            ],
            out_specs=pl.BlockSpec((None, out_f, tT), lambda b, t: (b, 0, t)),
        ),
        compiler_params=pltpu.CompilerParams(
            dimension_semantics=("parallel", "parallel")),
        cost_estimate=cost,
    )(w_c, x_c)

    # Per-neuron constants: tiny one-shot kernel, hoisted out of the grid.
    # Always computed from the full-precision weight.
    wt_f32 = weight.astype(jnp.float32).T  # (in_f, out_f) — negligible copy
    vmem = pl.BlockSpec(memory_space=pltpu.MemorySpace.VMEM)
    scale, mult = pl.pallas_call(
        functools.partial(_neuron_const_kernel, scaling=scaling),
        out_shape=(
            jax.ShapeDtypeStruct((1, out_f), jnp.float32),
            jax.ShapeDtypeStruct((1, out_f), jnp.float32),
        ),
        in_specs=[vmem],
        out_specs=(vmem, vmem),
    )(wt_f32)

    return outs, threshold, scale, mult, alpha


# ----------------------------------------------------------------------------
# Demo / self-check
# ----------------------------------------------------------------------------
if __name__ == "__main__":
    scaling = 5e8 * (1.0 / pi) * 1e-9 / 2.0

    def check(B, in_f, out_f, T, key):
        kx, kw = jax.random.split(key)
        bound = 1.0 / (in_f ** 0.5)  # default nn.Linear init U(-1/sqrt(in), +)
        weight = jax.random.uniform(kw, (out_f, in_f), jnp.float32, -bound, bound)
        x = jax.random.normal(kx, (B, in_f, T), jnp.float32)

        outs, threshold, scale, mult, alpha = jax.block_until_ready(
            dense_forward(x, weight)
        )

        # Pure-JAX reference for the implemented portion.
        ref_outs = jnp.einsum("oi,bit->bot", weight, x)
        c_ref = jnp.maximum((1.0 + weight.sum(axis=1)) / scaling, 0.0)[None, :]
        ref_scale = -1.0 / (1.0 + c_ref)
        ref_mult = (c_ref - 1.0) / (c_ref + 1.0)

        assert outs.shape == (B, out_f, T)
        assert scale.shape == (1, out_f) and mult.shape == (1, out_f)
        assert threshold == -0.5 and alpha == 0.5
        assert jnp.allclose(outs, ref_outs, atol=1e-4, rtol=1e-4)
        assert jnp.allclose(scale, ref_scale, atol=1e-6, rtol=1e-6)
        assert jnp.allclose(mult, ref_mult, atol=1e-6, rtol=1e-6)

    key = jax.random.PRNGKey(0)
    k1, k2 = jax.random.split(key)
    # Small shape matching the module's convention (B, in_features, T).
    check(B=2, in_f=32, out_f=16, T=8, key=k1)
    # Lane-dense / tiled path (T multiple of 128 exercises the time grid).
    check(B=2, in_f=64, out_f=32, T=256, key=k2)

    print("KERNEL_OK")
</pallas_src>

<mosaic_0001>
module attributes {stable_mosaic.version = 11 : i64} {
  func.func @_dense_matmul_kernel(%arg0: i32, %arg1: i32, %arg2: memref<16x32xf32, #tpu.memory_space<vmem>>, %arg3: memref<1x32x8xf32, #tpu.memory_space<vmem>>, %arg4: memref<1x16x8xf32, #tpu.memory_space<vmem>>) attributes {dimension_semantics = [#tpu.dimension_semantics<parallel>, #tpu.dimension_semantics<parallel>], iteration_bounds = array<i64: 2, 1>, scalar_prefetch = 0 : i64, scratch_operands = 0 : i64, tpu.core_type = #tpu.core_type<tc>, window_params = [{pipeline_mode = #tpu.pipeline_mode<synchronous>, transform_indices = @transform_0, window_bounds = array<i64: 16, 32>}, {transform_indices = @transform_1, window_bounds = array<i64: 1, 32, 8>}, {transform_indices = @transform_2, window_bounds = array<i64: 1, 16, 8>}]} {
    %c0 = arith.constant 0 : index
    %c0_0 = arith.constant 0 : index
    %0 = vector.load %arg2[%c0, %c0_0] : memref<16x32xf32, #tpu.memory_space<vmem>>, vector<16x32xf32>
    %c0_1 = arith.constant 0 : index
    %c0_2 = arith.constant 0 : index
    %c0_3 = arith.constant 0 : index
    %1 = vector.load %arg3[%c0_1, %c0_2, %c0_3] : memref<1x32x8xf32, #tpu.memory_space<vmem>>, vector<1x32x8xf32>
    %2 = vector.shape_cast %1 : vector<1x32x8xf32> to vector<32x8xf32>
    %cst = arith.constant dense<0.000000e+00> : vector<16x8xf32>
    %3 = tpu.matmul %0, %2, %cst {dimension_numbers = #tpu.dot_dimension_numbers<[1], [0], [0], [1], [0, 0, 1, 1], [], []>} : vector<16x32xf32>, vector<32x8xf32>, vector<16x8xf32> -> vector<16x8xf32>
    %c0_4 = arith.constant 0 : index
    %c0_5 = arith.constant 0 : index
    %c0_6 = arith.constant 0 : index
    %4 = vector.load %arg4[%c0_4, %c0_5, %c0_6] : memref<1x16x8xf32, #tpu.memory_space<vmem>>, vector<1x16x8xf32>
    %5 = vector.shape_cast %4 : vector<1x16x8xf32> to vector<16x8xf32>
    %6 = vector.shape_cast %3 : vector<16x8xf32> to vector<1x16x8xf32>
    tpu.vector_store %arg4[%c0_4, %c0_5, %c0_6], %6 {strides = array<i32>} : memref<1x16x8xf32, #tpu.memory_space<vmem>>, vector<1x16x8xf32>,
    return
  }
  func.func @transform_0(%arg0: i32, %arg1: i32) -> (i32, i32) {
    %c0_i32 = arith.constant 0 : i32
    %c0_i32_0 = arith.constant 0 : i32
    %c0_i32_1 = arith.constant 0 : i32
    return %c0_i32, %c0_i32_0 : i32, i32
  }
  func.func @transform_1(%arg0: i32, %arg1: i32) -> (i32, i32, i32) {
    %c0_i32 = arith.constant 0 : i32
    %c0_i32_0 = arith.constant 0 : i32
    return %arg0, %c0_i32, %arg1 : i32, i32, i32
  }
  func.func @transform_2(%arg0: i32, %arg1: i32) -> (i32, i32, i32) {
    %c0_i32 = arith.constant 0 : i32
    %c0_i32_0 = arith.constant 0 : i32
    return %arg0, %c0_i32, %arg1 : i32, i32, i32
  }
}

</mosaic_0001>

<bundles_post_ra>
// kernel: tpu_custom_call.1
= control target key start
LH: loop header
LB: loop body
LE: loop exit
PB: predicated region body
PF: predicated region fallthrough
CT: control target
= control target key end

     0   :  { %s452_s9 = smov 0   ;;  %s454_s10 = smov 0   ;;  %s493_s0 = inlined_call_operand.vmem [shape: f32[16,32], index: 0, kind: input, shape index: {}]   ;;  %s494_s1 = inlined_call_operand.vmem [shape: f32[2,32,8], index: 1, kind: input, shape index: {}]   ;;  %s495_s2 = inlined_call_operand.vmem [shape: f32[2,16,8], index: 2, kind: output, shape index: {}]  }
   0x1   :  { %s456_s11 = smov 0  }
   0x2 LB: > { %s24_s12 = sadd.s32 1, %s431_s10  ;;  %p353_p0 = scmp.ge.s32.totalorder %s435_s11, 1  ;;  %s435_s11 = sphi %s456_s11, %s12_s11   ;;  %s431_s10 = sphi %s454_s10, %s497_s10   ;;  %s427_s9 = sphi %s452_s9, %s496_s9  }
   0x3   : > { %p26_p1 = scmp.ge.s32.totalorder %s24_s12, 2  ;;  %p131_p2 = scmp.lt.s32.totalorder %s435_s11, 3 }
   0x5   : > { %s499_s12 = smov (%p26_p1, %s24_s12), 0  ;;  %p132_p3 = pnand %p353_p0, %p131_p2 }
   0x6   : > { %p159_p4 = scmp.lt.s32.totalorder (!%p132_p3), %s427_s9, 1  ;;  %v175_v0 = vld [vmem:[%s493_s0] sm:$0xff] (!%p132_p3)  ;;  %vm181_vm0 = vcmask (!%p132_p3), 261120   ;;  %v176_v7 = vld [vmem:[%s493_s0 + $0x8] sm:$0xff] (!%p132_p3)  ;;  %vm263_vm1 = vcmask (!%p132_p3), 64512  }
   0x7   : > { %135 = sbr.rel (%p132_p3) target bundleno = 242 (0xf2), region = 28  ;;  %378 = vmatprep.mubr.msk.f32.mxu0 (!%p132_p3), %vm181_vm0, %v175_v0 }
   0xe   : > { %s501_s9 = smov (!%p159_p4, %s427_s9), 1 }
   0xf   : > { %s362_s15 = sshll.u32 %s501_s9, 5  ;;  %s363_s21 = sshll.u32 %s501_s9, 4 }
  0x10   : > { %s166_s18 = scalar_lea.vmem %s494_s1, %s362_s15  ;;  %s174_s24 = scalar_lea.vmem %s495_s2, %s363_s21 }
  0x11   : > { %v177_v1 = vld [vmem:[%s166_s18] sm:$0xff]  ;;  %v178_v2 = vld [vmem:[%s166_s18 + $0x8] sm:$0xff]  ;;  %v179_v3 = vld [vmem:[%s166_s18 + $0x10] sm:$0xff] }
  0x12   : > { %v381_v4 = vpack.c.bf16 %v178_v2, %v177_v1  ;;  %v180_v5 = vld [vmem:[%s166_s18 + $0x18] sm:$0xff] }
  0x13   : > { %v385_v6 = vpack.c.bf16 %v180_v5, %v179_v3 }
  0x14   : > { %382 = vmatprep.subr.bf16.mxu0 %v381_v4 }
  0x15   : > { %384 = vmatpush3.bf16.msra.mxu0 %v381_v4 }
  0x16   : > { %386 = vmatprep.subr.bf16.mxu0 %v385_v6 }
  0x19   : > { %388 = vmatpush3.bf16.msra.mxu0 %v385_v6 }
  0x1c   : > { %379 = vmatmul.mubr.msk.f32.vlgmr.msra.gmra.mrb[0].mxu0 %vm181_vm0, %v176_v7 }
  0xef   : > { %v380_v8 = vpop.f32.mrb[0].mxu0 }
  0xf0   : > { %265 = vst.msk [vmem:[%s174_s24 + $0x8] sm:$0xff] %vm263_vm1, %v380_v8  ;;  %v254_v9 = vpop.f32.mrb[1].mxu0 }
  0xf1   : > { %264 = vst.msk [vmem:[%s174_s24] sm:$0xff] %vm263_vm1, %v254_v9 }
  0xf2 PF: > { %s12_s11 = sadd.s32 1, %s435_s11   ;;  %s496_s9 = smov %s431_s10 }
  0xf3   : > { %p9_p5 = scmp.ge.s32.totalorder %s12_s11, 4   ;;  %s497_s10 = smov %s499_s12 }
  0xf5   :  { %11 = sbr.rel (!%p9_p5) target bundleno = 2 (0x2), region = 58 }

</bundles_post_ra>
